<compile_context>
chip_gen: v6e
topology: v6e:2x2x1
jax: 0.10.0
libtpu: 0.0.40
codegen_flags: <defaults>
</compile_context>

<pallas_src>
import jax
import jax.numpy as jnp
from jax.experimental import pallas as pl
from jax.experimental.pallas import tpu as pltpu


_TARGET_STEP_BYTES = 4 << 20      # ~4 MiB of input+output bytes per grid step


def _vmem_capacity_bytes():
    try:
        cap = getattr(pltpu.get_tpu_info(), "vmem_capacity_bytes", None)
        if cap:
            return int(cap)
    except Exception:
        pass
    return 64 << 20               # conservative default (v7x per-TensorCore VMEM)


def _vmem_limit_bytes(block_bytes, cap):
    # enough for the double-buffered blocks + headroom, but below physical VMEM
    return int(min(int(cap * 0.9), max(block_bytes + (8 << 20), 32 << 20)))


def _make_vpu_kernel(c_in, c_out):
    """Unrolled channel contraction on sublane-dense (tile_rows, 128) slabs.

    Each output-channel slab is produced and stored directly (no concatenate),
    so live vregs stay at ~one slab regardless of C_out."""
    def kernel(x_ref, w_ref, b_ref, o_ref):
        # x_ref: (C_in, tile_rows, 128) VMEM
        # w_ref: (C_out, C_in) SMEM ; b_ref: (C_out,) SMEM
        # o_ref: (C_out, tile_rows, 128) VMEM
        for o in range(c_out):
            acc = x_ref[0] * w_ref[o, 0]
            for c in range(1, c_in):
                acc = acc + x_ref[c] * w_ref[o, c]
            o_ref[o] = (acc + b_ref[o]).astype(o_ref.dtype)
    return kernel


def _mxu_kernel(x_ref, w_ref, b_ref, o_ref):
    # x_ref: (C_in, tile_hw); w_ref: (C_out, C_in); b_ref: (C_out, 1) — all VMEM.
    # Default matmul precision (f32 accumulate via preferred_element_type); see
    # documented tolerance in the test below.
    acc = jnp.dot(w_ref[...], x_ref[...], preferred_element_type=jnp.float32)
    o_ref[...] = (acc + b_ref[...]).astype(o_ref.dtype)


def outconv_pallas(x, weight, bias):
    """1x1 conv (PyTorch nn.Conv2d(kernel_size=1)) on NCHW input.

    x: (N, C_in, H, W); weight: (C_out, C_in, 1, 1); bias: (C_out,)
    returns: (N, C_out, H, W)
    """
    N, C_in, H, W = x.shape
    C_out = weight.shape[0]
    HW = H * W
    w2 = weight.reshape(C_out, C_in)
    dtype_bytes = x.dtype.itemsize

    vmem_cap = _vmem_capacity_bytes()
    vmem_budget = vmem_cap // 2          # double-buffered blocks kept in ~half of VMEM

    # Lowered VPU->MXU crossover: mid-size channel counts go to the MXU instead
    # of becoming VALU-bound in the unrolled FMA path.
    use_mxu = (C_in * C_out >= 256) or (C_out >= 8 and C_in >= 16)

    if (not use_mxu) and (HW % 128 == 0):
        # ---------------- sublane-dense VPU path ----------------
        rows = HW // 128
        per_row = (C_in + C_out) * 128 * dtype_bytes            # in+out bytes per row
        tile_rows = min(rows,
                        max(8, vmem_budget // (2 * per_row)),    # double-buffered fit
                        max(8, _TARGET_STEP_BYTES // per_row))   # amortize step overhead
        if tile_rows < rows:
            tile_rows = max(8, (tile_rows // 8) * 8)             # (8,128) legality
        elif N == 1 and rows >= 16:
            tile_rows = max(8, ((rows // 2) // 8) * 8)           # >=2 steps → both v7x TCs
        grid = (N, pl.cdiv(rows, tile_rows))

        x4 = x.reshape(N, C_in, rows, 128)                       # free reshape
        block_bytes = 2 * (C_in + C_out) * tile_rows * 128 * dtype_bytes
        out = pl.pallas_call(
            _make_vpu_kernel(C_in, C_out),
            out_shape=jax.ShapeDtypeStruct((N, C_out, rows, 128), x.dtype),
            grid_spec=pltpu.PrefetchScalarGridSpec(
                num_scalar_prefetch=0,
                grid=grid,
                in_specs=[
                    pl.BlockSpec((None, C_in, tile_rows, 128),
                                 lambda n, t: (n, 0, t, 0)),
                    pl.BlockSpec(memory_space=pltpu.MemorySpace.SMEM),   # weights
                    pl.BlockSpec(memory_space=pltpu.MemorySpace.SMEM),   # bias
                ],
                out_specs=pl.BlockSpec((None, C_out, tile_rows, 128),
                                       lambda n, t: (n, 0, t, 0)),
            ),
            compiler_params=pltpu.CompilerParams(
                dimension_semantics=("parallel", "parallel"),
                vmem_limit_bytes=_vmem_limit_bytes(block_bytes, vmem_cap)),
        )(x4, w2.astype(jnp.float32), bias.astype(jnp.float32))
        return out.reshape(N, C_out, H, W)

    # ----- lane-dense MXU path (also the fallback when HW % 128 != 0) -----
    per_col = (C_in + C_out) * dtype_bytes                        # in+out bytes per pixel
    tile_hw = min(max(128, vmem_budget // (2 * per_col)),
                  max(128, _TARGET_STEP_BYTES // per_col))
    if HW <= tile_hw:
        tile_hw = HW                                              # full-dim tile (exempt)
        if N == 1 and HW >= 1024 and HW % 256 == 0:
            tile_hw = HW // 2                                     # >=2 steps → both v7x TCs
    else:
        tile_hw = (tile_hw // 128) * 128                          # lane-dense tiles
    grid = (N, pl.cdiv(HW, tile_hw))

    x3 = x.reshape(N, C_in, HW)                                   # free reshape
    block_bytes = 2 * (C_in + C_out) * tile_hw * dtype_bytes
    out = pl.pallas_call(
        _mxu_kernel,
        out_shape=jax.ShapeDtypeStruct((N, C_out, HW), x.dtype),
        grid_spec=pltpu.PrefetchScalarGridSpec(
            num_scalar_prefetch=0,
            grid=grid,
            in_specs=[
                pl.BlockSpec((None, C_in, tile_hw), lambda n, t: (n, 0, t)),
                pl.BlockSpec((C_out, C_in), lambda n, t: (0, 0)),   # weights resident
                pl.BlockSpec((C_out, 1), lambda n, t: (0, 0)),      # bias resident
            ],
            out_specs=pl.BlockSpec((None, C_out, tile_hw), lambda n, t: (n, 0, t)),
        ),
        compiler_params=pltpu.CompilerParams(
            dimension_semantics=("parallel", "parallel"),
            vmem_limit_bytes=_vmem_limit_bytes(block_bytes, vmem_cap)),
    )(x3, w2, bias.reshape(C_out, 1))
    return out.reshape(N, C_out, H, W)


def _reference(x, weight, bias):
    C_out, C_in = weight.shape[0], weight.shape[1]
    return (jnp.einsum("nchw,oc->nohw", x, weight.reshape(C_out, C_in),
                       precision=jax.lax.Precision.HIGHEST)
            + bias[None, :, None, None])


if __name__ == "__main__":
    key = jax.random.PRNGKey(0)
    k1, k2, k3 = jax.random.split(key, 3)

    # 1) OutConv-typical: tiny channel counts -> sublane-dense VPU path.
    N, C_in, C_out, H, W = 2, 4, 2, 16, 16
    kx, kw, kb = jax.random.split(k1, 3)
    bound = 1.0 / (C_in ** 0.5)
    x = jax.random.normal(kx, (N, C_in, H, W), dtype=jnp.float32)
    weight = jax.random.uniform(kw, (C_out, C_in, 1, 1), jnp.float32, -bound, bound)
    bias = jax.random.uniform(kb, (C_out,), jnp.float32, -bound, bound)
    out = jax.block_until_ready(outconv_pallas(x, weight, bias))
    ref = _reference(x, weight, bias)
    assert out.shape == (N, C_out, H, W)
    assert jnp.allclose(out, ref, atol=1e-5, rtol=1e-5), "VPU path mismatch"

    # 2) Larger channel counts: exercises the MXU path (HW=64 -> full-dim tile).
    #    Tolerance is relaxed/documented: the kernel uses default matmul
    #    precision (generation-dependent bf16 passes) vs the HIGHEST-precision
    #    reference.
    N2, C_in2, C_out2, H2, W2 = 1, 128, 8, 8, 8
    kx2, kw2, kb2 = jax.random.split(k2, 3)
    bound2 = 1.0 / (C_in2 ** 0.5)
    x2 = jax.random.normal(kx2, (N2, C_in2, H2, W2), dtype=jnp.float32)
    w2_ = jax.random.uniform(kw2, (C_out2, C_in2, 1, 1), jnp.float32, -bound2, bound2)
    b2_ = jax.random.uniform(kb2, (C_out2,), jnp.float32, -bound2, bound2)
    out2 = jax.block_until_ready(outconv_pallas(x2, w2_, b2_))
    ref2 = _reference(x2, w2_, b2_)
    assert out2.shape == (N2, C_out2, H2, W2)
    assert jnp.allclose(out2, ref2, atol=1e-2, rtol=1e-2), "MXU path mismatch"

    # 3) N=1 with a spatial row count that does not divide the tile: exercises
    #    the 2-TensorCore split and the ragged last spatial block (no jnp.pad).
    N3, C_in3, C_out3, H3, W3 = 1, 3, 1, 48, 48
    kx3, kw3, kb3 = jax.random.split(k3, 3)
    bound3 = 1.0 / (C_in3 ** 0.5)
    x3_ = jax.random.normal(kx3, (N3, C_in3, H3, W3), dtype=jnp.float32)
    w3_ = jax.random.uniform(kw3, (C_out3, C_in3, 1, 1), jnp.float32, -bound3, bound3)
    b3_ = jax.random.uniform(kb3, (C_out3,), jnp.float32, -bound3, bound3)
    out3 = jax.block_until_ready(outconv_pallas(x3_, w3_, b3_))
    ref3 = _reference(x3_, w3_, b3_)
    assert out3.shape == (N3, C_out3, H3, W3)
    assert jnp.allclose(out3, ref3, atol=1e-5, rtol=1e-5), "ragged-block path mismatch"

    print("KERNEL_OK")
</pallas_src>

<mosaic_0001>
module attributes {stable_mosaic.version = 11 : i64} {
  func.func @kernel(%arg0: i32, %arg1: i32, %arg2: memref<1x4x2x128xf32, #tpu.memory_space<vmem>>, %arg3: memref<2x4xf32, #tpu.memory_space<smem>>, %arg4: memref<2xf32, #tpu.memory_space<smem>>, %arg5: memref<1x2x2x128xf32, #tpu.memory_space<vmem>>) attributes {dimension_semantics = [#tpu.dimension_semantics<parallel>, #tpu.dimension_semantics<parallel>], iteration_bounds = array<i64: 2, 1>, scalar_prefetch = 0 : i64, scratch_operands = 0 : i64, tpu.core_type = #tpu.core_type<tc>, window_params = [{transform_indices = @transform_0, window_bounds = array<i64: 1, 4, 2, 128>}, {transform_indices = @transform_1, window_bounds = array<i64: 2, 4>}, {transform_indices = @transform_2, window_bounds = array<i64: 2>}, {transform_indices = @transform_3, window_bounds = array<i64: 1, 2, 2, 128>}]} {
    %c0 = arith.constant 0 : index
    %c0_0 = arith.constant 0 : index
    %c0_1 = arith.constant 0 : index
    %c0_2 = arith.constant 0 : index
    %0 = vector.load %arg2[%c0, %c0_0, %c0_1, %c0_2] : memref<1x4x2x128xf32, #tpu.memory_space<vmem>>, vector<1x1x2x128xf32>
    %1 = vector.shape_cast %0 : vector<1x1x2x128xf32> to vector<2x128xf32>
    %c0_3 = arith.constant 0 : index
    %c0_4 = arith.constant 0 : index
    %2 = memref.load %arg3[%c0_3, %c0_4] : memref<2x4xf32, #tpu.memory_space<smem>>
    %3 = vector.broadcast %2 : f32 to vector<2x128xf32>
    %4 = arith.mulf %1, %3 : vector<2x128xf32>
    %c0_5 = arith.constant 0 : index
    %c1 = arith.constant 1 : index
    %c0_6 = arith.constant 0 : index
    %c0_7 = arith.constant 0 : index
    %5 = vector.load %arg2[%c0_5, %c1, %c0_6, %c0_7] : memref<1x4x2x128xf32, #tpu.memory_space<vmem>>, vector<1x1x2x128xf32>
    %6 = vector.shape_cast %5 : vector<1x1x2x128xf32> to vector<2x128xf32>
    %c0_8 = arith.constant 0 : index
    %c1_9 = arith.constant 1 : index
    %7 = memref.load %arg3[%c0_8, %c1_9] : memref<2x4xf32, #tpu.memory_space<smem>>
    %8 = vector.broadcast %7 : f32 to vector<2x128xf32>
    %9 = arith.mulf %6, %8 : vector<2x128xf32>
    %10 = arith.addf %4, %9 : vector<2x128xf32>
    %c0_10 = arith.constant 0 : index
    %c2 = arith.constant 2 : index
    %c0_11 = arith.constant 0 : index
    %c0_12 = arith.constant 0 : index
    %11 = vector.load %arg2[%c0_10, %c2, %c0_11, %c0_12] : memref<1x4x2x128xf32, #tpu.memory_space<vmem>>, vector<1x1x2x128xf32>
    %12 = vector.shape_cast %11 : vector<1x1x2x128xf32> to vector<2x128xf32>
    %c0_13 = arith.constant 0 : index
    %c2_14 = arith.constant 2 : index
    %13 = memref.load %arg3[%c0_13, %c2_14] : memref<2x4xf32, #tpu.memory_space<smem>>
    %14 = vector.broadcast %13 : f32 to vector<2x128xf32>
    %15 = arith.mulf %12, %14 : vector<2x128xf32>
    %16 = arith.addf %10, %15 : vector<2x128xf32>
    %c0_15 = arith.constant 0 : index
    %c3 = arith.constant 3 : index
    %c0_16 = arith.constant 0 : index
    %c0_17 = arith.constant 0 : index
    %17 = vector.load %arg2[%c0_15, %c3, %c0_16, %c0_17] : memref<1x4x2x128xf32, #tpu.memory_space<vmem>>, vector<1x1x2x128xf32>
    %18 = vector.shape_cast %17 : vector<1x1x2x128xf32> to vector<2x128xf32>
    %c0_18 = arith.constant 0 : index
    %c3_19 = arith.constant 3 : index
    %19 = memref.load %arg3[%c0_18, %c3_19] : memref<2x4xf32, #tpu.memory_space<smem>>
    %20 = vector.broadcast %19 : f32 to vector<2x128xf32>
    %21 = arith.mulf %18, %20 : vector<2x128xf32>
    %22 = arith.addf %16, %21 : vector<2x128xf32>
    %c0_20 = arith.constant 0 : index
    %23 = memref.load %arg4[%c0_20] : memref<2xf32, #tpu.memory_space<smem>>
    %24 = vector.broadcast %23 : f32 to vector<2x128xf32>
    %25 = arith.addf %22, %24 : vector<2x128xf32>
    %c0_21 = arith.constant 0 : index
    %c0_22 = arith.constant 0 : index
    %c0_23 = arith.constant 0 : index
    %c0_24 = arith.constant 0 : index
    %26 = vector.load %arg5[%c0_21, %c0_22, %c0_23, %c0_24] : memref<1x2x2x128xf32, #tpu.memory_space<vmem>>, vector<1x1x2x128xf32>
    %27 = vector.shape_cast %26 : vector<1x1x2x128xf32> to vector<2x128xf32>
    %28 = vector.shape_cast %25 : vector<2x128xf32> to vector<1x1x2x128xf32>
    tpu.vector_store %arg5[%c0_21, %c0_22, %c0_23, %c0_24], %28 {strides = array<i32>} : memref<1x2x2x128xf32, #tpu.memory_space<vmem>>, vector<1x1x2x128xf32>,
    %c0_25 = arith.constant 0 : index
    %c0_26 = arith.constant 0 : index
    %c0_27 = arith.constant 0 : index
    %c0_28 = arith.constant 0 : index
    %29 = vector.load %arg2[%c0_25, %c0_26, %c0_27, %c0_28] : memref<1x4x2x128xf32, #tpu.memory_space<vmem>>, vector<1x1x2x128xf32>
    %30 = vector.shape_cast %29 : vector<1x1x2x128xf32> to vector<2x128xf32>
    %c1_29 = arith.constant 1 : index
    %c0_30 = arith.constant 0 : index
    %31 = memref.load %arg3[%c1_29, %c0_30] : memref<2x4xf32, #tpu.memory_space<smem>>
    %32 = vector.broadcast %31 : f32 to vector<2x128xf32>
    %33 = arith.mulf %30, %32 : vector<2x128xf32>
    %c0_31 = arith.constant 0 : index
    %c1_32 = arith.constant 1 : index
    %c0_33 = arith.constant 0 : index
    %c0_34 = arith.constant 0 : index
    %34 = vector.load %arg2[%c0_31, %c1_32, %c0_33, %c0_34] : memref<1x4x2x128xf32, #tpu.memory_space<vmem>>, vector<1x1x2x128xf32>
    %35 = vector.shape_cast %34 : vector<1x1x2x128xf32> to vector<2x128xf32>
    %c1_35 = arith.constant 1 : index
    %c1_36 = arith.constant 1 : index
    %36 = memref.load %arg3[%c1_35, %c1_36] : memref<2x4xf32, #tpu.memory_space<smem>>
    %37 = vector.broadcast %36 : f32 to vector<2x128xf32>
    %38 = arith.mulf %35, %37 : vector<2x128xf32>
    %39 = arith.addf %33, %38 : vector<2x128xf32>
    %c0_37 = arith.constant 0 : index
    %c2_38 = arith.constant 2 : index
    %c0_39 = arith.constant 0 : index
    %c0_40 = arith.constant 0 : index
    %40 = vector.load %arg2[%c0_37, %c2_38, %c0_39, %c0_40] : memref<1x4x2x128xf32, #tpu.memory_space<vmem>>, vector<1x1x2x128xf32>
    %41 = vector.shape_cast %40 : vector<1x1x2x128xf32> to vector<2x128xf32>
    %c1_41 = arith.constant 1 : index
    %c2_42 = arith.constant 2 : index
    %42 = memref.load %arg3[%c1_41, %c2_42] : memref<2x4xf32, #tpu.memory_space<smem>>
    %43 = vector.broadcast %42 : f32 to vector<2x128xf32>
    %44 = arith.mulf %41, %43 : vector<2x128xf32>
    %45 = arith.addf %39, %44 : vector<2x128xf32>
    %c0_43 = arith.constant 0 : index
    %c3_44 = arith.constant 3 : index
    %c0_45 = arith.constant 0 : index
    %c0_46 = arith.constant 0 : index
    %46 = vector.load %arg2[%c0_43, %c3_44, %c0_45, %c0_46] : memref<1x4x2x128xf32, #tpu.memory_space<vmem>>, vector<1x1x2x128xf32>
    %47 = vector.shape_cast %46 : vector<1x1x2x128xf32> to vector<2x128xf32>
    %c1_47 = arith.constant 1 : index
    %c3_48 = arith.constant 3 : index
    %48 = memref.load %arg3[%c1_47, %c3_48] : memref<2x4xf32, #tpu.memory_space<smem>>
    %49 = vector.broadcast %48 : f32 to vector<2x128xf32>
    %50 = arith.mulf %47, %49 : vector<2x128xf32>
    %51 = arith.addf %45, %50 : vector<2x128xf32>
    %c1_49 = arith.constant 1 : index
    %52 = memref.load %arg4[%c1_49] : memref<2xf32, #tpu.memory_space<smem>>
    %53 = vector.broadcast %52 : f32 to vector<2x128xf32>
    %54 = arith.addf %51, %53 : vector<2x128xf32>
    %c0_50 = arith.constant 0 : index
    %c1_51 = arith.constant 1 : index
    %c0_52 = arith.constant 0 : index
    %c0_53 = arith.constant 0 : index
    %55 = vector.load %arg5[%c0_50, %c1_51, %c0_52, %c0_53] : memref<1x2x2x128xf32, #tpu.memory_space<vmem>>, vector<1x1x2x128xf32>
    %56 = vector.shape_cast %55 : vector<1x1x2x128xf32> to vector<2x128xf32>
    %57 = vector.shape_cast %54 : vector<2x128xf32> to vector<1x1x2x128xf32>
    tpu.vector_store %arg5[%c0_50, %c1_51, %c0_52, %c0_53], %57 {strides = array<i32>} : memref<1x2x2x128xf32, #tpu.memory_space<vmem>>, vector<1x1x2x128xf32>,
    return
  }
  func.func @transform_0(%arg0: i32, %arg1: i32) -> (i32, i32, i32, i32) {
    %c0_i32 = arith.constant 0 : i32
    %c0_i32_0 = arith.constant 0 : i32
    %c0_i32_1 = arith.constant 0 : i32
    return %arg0, %c0_i32, %arg1, %c0_i32_0 : i32, i32, i32, i32
  }
  func.func @transform_1(%arg0: i32, %arg1: i32) -> (i32, i32) {
    %c0_i32 = arith.constant 0 : i32
    %c0_i32_0 = arith.constant 0 : i32
    %c0_i32_1 = arith.constant 0 : i32
    return %c0_i32, %c0_i32_0 : i32, i32
  }
  func.func @transform_2(%arg0: i32, %arg1: i32) -> i32 {
    %c0_i32 = arith.constant 0 : i32
    %c0_i32_0 = arith.constant 0 : i32
    return %c0_i32 : i32
  }
  func.func @transform_3(%arg0: i32, %arg1: i32) -> (i32, i32, i32, i32) {
    %c0_i32 = arith.constant 0 : i32
    %c0_i32_0 = arith.constant 0 : i32
    %c0_i32_1 = arith.constant 0 : i32
    return %arg0, %c0_i32, %arg1, %c0_i32_0 : i32, i32, i32, i32
  }
}

</mosaic_0001>

<bundles_post_ra>
// kernel: tpu_custom_call.1
= control target key start
LH: loop header
LB: loop body
LE: loop exit
PB: predicated region body
PF: predicated region fallthrough
CT: control target
= control target key end

     0   :  { %s894_s0 = inlined_call_operand.hbm [shape: f32[2,4,2,128], index: 0, kind: input, shape index: {}]   ;;  %s895_s1 = inlined_call_operand.hbm [shape: f32[2,4], index: 1, kind: input, shape index: {}]   ;;  %s896_s2 = inlined_call_operand.vmem [shape: f32[2], index: 2, kind: input, shape index: {}]   ;;  %s897_s3 = inlined_call_operand.hbm [shape: f32[2,2,2,128], index: 3, kind: output, shape index: {}]  }
   0x1   :  { %899 = sst [smem:[#allocation14_spill]] %s895_s1 }
   0x2   :  { %8 = vsyncpa [#allocation3], 0 }
   0x3   :  { %10 = vsyncpa [#allocation3 + $0x1], 0 }
   0x4   :  { %11 = vsyncpa [#allocation5], 0 }
   0x5   :  { %12 = vsyncpa [#allocation6], 0 }
   0x6   :  { %13 = vsyncpa [#allocation4], 0 }
   0x7   :  { %15 = vsyncpa [#allocation4 + $0x1], 0  ;;  %s700_s12 = smov 0   ;;  %s702_s13 = smov 0  }
   0x8   :  { %s704_s14 = smov 0   ;;  %s706_s15 = smov 0  }
   0x9   :  { %s708_s16 = smov 0   ;;  %s710_s17 = smov 0  }
   0xa LB: > { %s405_s18 = sadd.s32 4294967295, %s670_s17   ;;  %s406_s19 = sadd.s32 4294967294, %s670_s17   ;;  %s670_s17 = sphi %s710_s17, %s21_s17   ;;  %s666_s16 = sphi %s708_s16, %s915_s16   ;;  %s662_s15 = sphi %s706_s15, %s914_s15   ;;  %s658_s14 = sphi %s704_s14, %s913_s14   ;;  %s654_s13 = sphi %s702_s13, %s912_s13   ;;  %s650_s12 = sphi %s700_s12, %s911_s12  }
   0xb   : > { %s42_s20 = sadd.s32 1, %s658_s14  ;;  %p49_p0 = scmp.ne.s32.totalorder %s658_s14, %s654_s13 }
   0xc   : > { %p50_p1 = scmp.eq.s32.totalorder %s670_s17, 0  ;;  %p55_p2 = scmp.ne.s32.totalorder %s654_s13, %s650_s12 }
   0xd   : > { %p738_p3 = scmp.eq.s32.totalorder %s405_s18, 0  ;;  %p123_p4 = scmp.eq.s32.totalorder %s405_s18, 1 }
   0xe   : > { %p51_p5 = por %p50_p1, %p49_p0  ;;  %p129_p6 = scmp.eq.s32.totalorder %s406_s19, 1 }
   0xf   : > { %p744_p7 = por %p738_p3, %p55_p2  ;;  %p748_p8 = por %p123_p4, %p49_p0 }
  0x10   : > { %p752_p9 = por %p129_p6, %p55_p2  ;;  %p407_p10 = scmp.ge.s32.totalorder %s670_s17, 1 }
  0x11   : > { %s902_s23 = scalar_select %p748_p8, 1, 0 }
  0x12   : > { %s903_s24 = scalar_select %p752_p9, 1, 0 }
  0x13   : > { %p136_p11 = scmp.lt.s32.totalorder %s670_s17, 3  ;;  %p470_p1 = scmp.lt.s32.totalorder %s670_s17, 2 }
  0x14   : > { %s158_s28 = sshll.u32 %s896_s2, 4  ;;  %s169_s4 = sand.u32 1, %s658_s14   ;;  %s159_s28 = int_to_ptr.vmem [resolvable:$true] %s158_s28 }
  0x15   : > { %p759_p13 = pnand %p407_p10, %p136_p11  ;;  %p769_p4 = pnand %p470_p1, %p51_p5 }
  0x16   : > { %s33_s5 = sadd.s32 1, %s666_s16  ;;  %s672_s6 = smov [#allocation7]  }
  0x17   : > { %p453_p0 = pneg %p759_p13  ;;  %s907_s1 = sld [smem:[#allocation14_spill]] }
  0x18   : > { %s539_s9 = scalar_lea.vmem %s159_s28, 16  ;;  %p547_p1 = scmp.lt.s32.totalorder %s159_s28, %s159_s28 }
  0x19   : > { %p775_p2 = pnand %p453_p0, %p738_p3  ;;  %p540_p5 = scmp.ne.s32.totalorder %s159_s28, %s539_s9 }
  0x1a   : > { %p548_p0 = scmp.lt.s32.totalorder %s539_s9, %s539_s9 }
  0x1b   : > { %p541_p6 = pneg %p775_p2 }
  0x1c   : > { %p549_p12 = por %p548_p0, %p547_p1 }
  0x1d   : > { %456 = dma.hbm_to_smem (!%p775_p2), %s907_s1, 32, %s672_s6, [#allocation5]  }
  0x1e   : > { %p542_p10 = pnand %p541_p6, %p540_p5 }
  0x20   : > { %p543_p11 = pneg %p542_p10 }
  0x22   : > { %p550_p9 = pnand %p549_p12, %p543_p11 }
  0x24   : > { %553 = shalt.err (!%p550_p9)
}
  0x25   : > { %s673_s10 = smov [#allocation8]   ;;  %p35_p8 = scmp.ge.s32.totalorder %s33_s5, 2 }
  0x26   : > { %459 = dma.vmem_to_smem (!%p775_p2), %s159_s28, 16, %s673_s10, [#allocation6]  }
  0x27   : > { %s411_s11 = sshll.u32 %s169_s4, 3  ;;  %s439_s18 = sshll.u32 %s666_s16, 7 }
  0x28   : > { %s917_s5 = smov (%p35_p8, %s33_s5), 0  ;;  %s180_s27 = scalar_lea.hbm %s894_s0, %s439_s18 }
  0x29   : > { %s37_s6 = ssub.s32 %s666_s16, %s917_s5  ;;  %s173_s7 = scalar_lea.vmem [#allocation2], %s411_s11 }
  0x2a   : > { %s181_s8 = sshll.u32 %s173_s7, 4  ;;  %p40_p9 = scmp.eq.s32.totalorder %s37_s6, 0  ;;  %s182_s8 = int_to_ptr.vmem [resolvable:$true] %s181_s8 }
  0x2b   : > { %s170_s9 = scalar_lea.sflag [#allocation3], %s169_s4  ;;  %p556_p12 = pneg %p769_p4 }
  0x2c   : > { %s801_s30 = scalar_select %p40_p9, %s658_s14, %s42_s20  }
  0x2d   : > { %s567_s28 = scalar_lea.vmem %s182_s8, 128  ;;  %s674_s10 = smov [#allocation2]  }
  0x2e   : > { %p568_p2 = scmp.ne.s32.totalorder %s182_s8, %s567_s28  ;;  %s572_s1 = sshll.u32 %s674_s10, 4  ;;  %s573_s1 = int_to_ptr.vmem [resolvable:$false] %s572_s1 }
  0x2f   : > { %s574_s19 = scalar_lea.vmem %s573_s1, 256  ;;  %p575_p6 = scmp.lt.s32.totalorder %s182_s8, %s573_s1 }
  0x30   : > { %p570_p8 = pnand %p568_p2, %p556_p12  ;;  %p576_p10 = scmp.lt.s32.totalorder %s574_s19, %s567_s28 }
  0x32   : > { %p571_p5 = pneg %p570_p8  ;;  %p577_p11 = por %p576_p10, %p575_p6 }
  0x34   : > { %p578_p1 = pnand %p577_p11, %p571_p5 }
  0x36   : > { %581 = shalt.err (!%p578_p1)
}
  0x37   : > { %s675_s11 = smov 32   ;;  %s676_s20 = smov 2  }
  0x38   : > { %463 = dma.hbm_to_vmem [thread:$0]  (!%p769_p4), %s180_s27, 128, %s182_s8, %s170_s9, %s675_s11, %s675_s11, %s676_s20  }
  0x39   : > { %193 = sbr.rel (%p759_p13) target bundleno = 106 (0x6a), region = 32  ;;  %s810_s4 = sand.u32 (!%p759_p13), 1, %s654_s13  }
  0x3a   : > { %s415_s18 = sshll.u32 (!%p759_p13), %s810_s4, 3  ;;  %s196_s1 = scalar_lea.sflag (!%p759_p13), [#allocation3], %s810_s4 }
  0x3b   : > { %s814_s26 = scalar_lea.vmem (!%p759_p13), [#allocation2], %s415_s18 }
  0x3e   : > { %633 = dma.done.wait (%p744_p7), %s196_s1, 128  }
  0x3f   : > { %635 = vsyncadd (%p744_p7), %s196_s1, 4294967168 }
  0x40   : > { %637 = dma.done.wait (%p738_p3), [#allocation5], 32  }
  0x41   : > { %639 = vsyncadd (%p738_p3), [#allocation5], 4294967264 }
  0x42   : > { %641 = dma.done.wait (%p738_p3), [#allocation6], 16  }
  0x43   : > { %643 = vsyncadd (%p738_p3), [#allocation6], 4294967280 }
  0x44   : > { %212 = sfence }
  0x45   : > { %s232_s25 = sld [smem:[#allocation7]]  ;;  %v231_v0 = vld [vmem:[%s814_s26] sm:$0x3]  ;;  %v419_v1 = vld [vmem:[%s814_s26 + $0x2] sm:$0x3]  ;;  %s418_s28 = sshll.u32 %s810_s4, 2 }
  0x46   : > { %s420_s22 = sld [smem:[#allocation7 + $0x1]]  ;;  %v421_v3 = vld [vmem:[%s814_s26 + $0x4] sm:$0x3]  ;;  %v423_v6 = vld [vmem:[%s814_s26 + $0x6] sm:$0x3]  ;;  %s230_s19 = scalar_lea.vmem [#allocation9], %s418_s28 }
  0x47   : > { %s422_s29 = sld [smem:[#allocation7 + $0x2]]  ;;  %v257_v11 = vld [vmem:[%s814_s26] sm:$0x3]  ;;  %v426_v14 = vld [vmem:[%s814_s26 + $0x2] sm:$0x3]  ;;  %s296_s11 = sshll.u32 %s230_s19, 4  ;;  %s841_s11 = int_to_ptr.vmem [resolvable:$true] %s296_s11 }
  0x48   : > { %s424_s27 = sld [smem:[#allocation7 + $0x3]]  ;;  %v428_v16 = vld [vmem:[%s814_s26 + $0x4] sm:$0x3]  ;;  %v430_v20 = vld [vmem:[%s814_s26 + $0x6] sm:$0x3]  ;;  %s440_s20 = sshll.u32 %s662_s15, 6 }
  0x49   : > { %s829_s6 = sld [smem:[#allocation8]]  ;;  %s846_s26 = scalar_lea.hbm %s897_s3, %s440_s20 }
  0x4a   : > { %s425_s7 = sld [smem:[#allocation7 + $0x80]]  ;;  %p908_p7 = scmp.ne.s32.totalorder %s902_s23, 0 }
  0x4b   : > { %v233_v2 = vstv %s232_s25  ;;  %s427_s21 = sld [smem:[#allocation7 + $0x81]]  ;;  %s282_s25 = scalar_lea.sflag [#allocation4], %s810_s4 }
  0x4c   : > { %v234_v4 = vmul.f32 %v233_v2, %v231_v0  ;;  %v238_v5 = vstv %s420_s22  ;;  %s429_s8 = sld [smem:[#allocation7 + $0x82]]  ;;  %s582_s22 = scalar_lea.vmem %s841_s11, 64 }
  0x4d   : > { %v239_v7 = vmul.f32 %v419_v1, %v238_v5  ;;  %v244_v8 = vstv %s422_s29  ;;  %s431_s9 = sld [smem:[#allocation7 + $0x83]]  ;;  %p583_p3 = scmp.ne.s32.totalorder %s841_s11, %s582_s22 }
  0x4e   : > { %v245_v9 = vmul.f32 %v421_v3, %v244_v8  ;;  %v250_v10 = vstv %s424_s27  ;;  %s432_s10 = sld [smem:[#allocation8 + $0x1]]  ;;  %s677_s15 = smov [#allocation9]  }
  0x4f   : > { %v240_v12 = vadd.f32 %v239_v7, %v234_v4  ;;  %v251_v13 = vmul.f32 %v423_v6, %v250_v10  ;;  %v254_v21 = vstv %s829_s6  ;;  %p584_p13 = pnand %p583_p3, %p908_p7  ;;  %s586_s29 = sshll.u32 %s677_s15, 4  ;;  %s587_s29 = int_to_ptr.vmem [resolvable:$false] %s586_s29 }
  0x50   : > { %v259_v15 = vstv %s425_s7  ;;  %s588_s27 = scalar_lea.vmem %s587_s29, 128  ;;  %p589_p0 = scmp.lt.s32.totalorder %s841_s11, %s587_s29 }
  0x51   : > { %v246_v17 = vadd.f32 %v245_v9, %v240_v12  ;;  %v260_v18 = vmul.f32 %v259_v15, %v257_v11  ;;  %v263_v19 = vstv %s427_s21  ;;  %p585_p4 = pneg %p584_p13  ;;  %p590_p9 = scmp.lt.s32.totalorder %s588_s27, %s582_s22 }
  0x52   : > { %v264_v22 = vmul.f32 %v426_v14, %v263_v19  ;;  %v268_v23 = vstv %s429_s8 }
  0x53   : > { %v252_v24 = vadd.f32 %v251_v13, %v246_v17  ;;  %v269_v25 = vmul.f32 %v428_v16, %v268_v23  ;;  %v273_v26 = vstv %s431_s9  ;;  %p591_p12 = por %p590_p9, %p589_p0 }
  0x54   : > { %v265_v27 = vadd.f32 %v264_v22, %v260_v18  ;;  %v274_v28 = vmul.f32 %v430_v20, %v273_v26  ;;  %v277_v31 = vstv %s432_s10 }
  0x55   : > { %v255_v29 = vadd.f32 %v254_v21, %v252_v24  ;;  %p592_p2 = pnand %p591_p12, %p585_p4 }
  0x56   : > { %v270_v30 = vadd.f32 %v269_v25, %v265_v27 }
  0x57   : > { %256 = vst [vmem:[%s230_s19] sm:$0x3] %v255_v29 }
  0x58   : > { %v275_v32 = vadd.f32 %v274_v28, %v270_v30 }
  0x5a   : > { %v278_v33 = vadd.f32 %v277_v31, %v275_v32 }
  0x5c   : > { %433 = vst [vmem:[%s230_s19 + $0x2] sm:$0x3] %v278_v33 }
  0x5d   : > { %595 = shalt.err (!%p592_p2)
}
  0x5e   : > { %s596_s6 = scalar_lea.hbm %s846_s26, 64  ;;  %s600_s8 = scalar_lea.hbm %s897_s3, 128 }
  0x5f   : > { %p597_p8 = scmp.ne.s32.totalorder %s846_s26, %s596_s6  ;;  %p601_p10 = scmp.lt.s32.totalorder %s846_s26, %s897_s3 }
  0x60   : > { %p602_p11 = scmp.lt.s32.totalorder %s600_s8, %s596_s6 }
  0x61   : > { %p598_p5 = pnand %p597_p8, %p908_p7 }
  0x62   : > { %p603_p1 = por %p602_p11, %p601_p10 }
  0x63   : > { %p599_p6 = pneg %p598_p5 }
  0x65   : > { %p604_p3 = pnand %p603_p1, %p599_p6 }
  0x67   : > { %607 = shalt.err (!%p604_p3)
}
  0x68   : > { %s678_s10 = smov 32   ;;  %s679_s19 = smov 2  }
  0x69   : > { %451 = dma.vmem_to_hbm [thread:$0]  (%p908_p7), %s841_s11, 64, %s846_s26, %s282_s25, %s678_s10, %s678_s10, %s679_s19  }
  0x6a PF: > { %s311_s20 = sand.u32 1, %s650_s12   ;;  %p909_p13 = scmp.ne.s32.totalorder %s903_s24, 0 }
  0x6b   : > { %p910_p4 = scmp.ge.s32.totalorder %s670_s17, 2  ;;  %s312_s18 = scalar_lea.sflag [#allocation4], %s311_s20 }
  0x6d   : > { %p465_p0 = pnand %p910_p4, %p909_p13 }
  0x6f   : > { %p466_p9 = pneg %p465_p0 }
  0x71   : > { %645 = dma.done.wait (%p466_p9), %s312_s18, 64  }
  0x72   : > { %647 = vsyncadd (%p466_p9), %s312_s18, 4294967232  ;;  %s21_s17 = sadd.s32 1, %s670_s17   ;;  %s911_s12 = smov %s654_s13 }
  0x73   : > { %p18_p12 = scmp.ge.s32.totalorder %s21_s17, 4   ;;  %s912_s13 = smov %s658_s14 }
  0x74   : > { %s913_s14 = smov %s801_s30  ;;  %s914_s15 = smov %s666_s16 }
  0x75   : > { %s915_s16 = smov %s917_s5  ;;  %20 = sbr.rel (!%p18_p12) target bundleno = 10 (0xa), region = 91 }
  0x7a   :  { %317 = vsyncpa [#allocation3], 1 }
  0x7b   :  { %319 = vsyncpa [#allocation3 + $0x1], 1 }
  0x7c   :  { %320 = vsyncpa [#allocation4], 1 }
  0x7d   :  { %322 = vsyncpa [#allocation4 + $0x1], 1 }
  0x7e   :  { %323 = vsyncpa [#allocation5], 1 }
  0x7f   :  { %325 = vsyncpa [#allocation5 + $0x1], 1 }
  0x80   :  { %326 = vsyncpa [#allocation6], 1 }
  0x81   :  { %328 = vsyncpa [#allocation6 + $0x1], 1 }

</bundles_post_ra>
